<compile_context>
chip_gen: v6e
topology: v6e:2x2x1
jax: 0.10.0
libtpu: 0.0.40
codegen_flags: <defaults>
</compile_context>

<pallas_src>
import jax
import jax.numpy as jnp
from jax.experimental import pallas as pl
from jax.experimental.pallas import tpu as pltpu

# Below this size a Pallas launch costs more than the copy itself; an identity can
# simply hand back `x` (or let XLA copy it) with no kernel at all.
_SMALL_TENSOR_BYTES = 1 << 20  # 1 MiB


def _hbm_copy_kernel(x_hbm_ref, o_hbm_ref, sem):
    # Single whole-array HBM -> HBM DMA.  No VMEM staging, no grid loop, no
    # vld/vst slots burned — the DMA engine streams at HBM bandwidth.
    cp = pltpu.make_async_copy(x_hbm_ref, o_hbm_ref, sem)
    cp.start()
    cp.wait()


def _identity_copy(x):
    """Materialized identity: bit-exact copy via one HBM->HBM DMA."""
    nbytes = x.size * jnp.dtype(x.dtype).itemsize
    return pl.pallas_call(
        _hbm_copy_kernel,
        out_shape=jax.ShapeDtypeStruct(x.shape, x.dtype),
        in_specs=[pl.BlockSpec(memory_space=pl.ANY)],   # stay in HBM, no auto-DMA
        out_specs=pl.BlockSpec(memory_space=pl.ANY),    # kernel writes it via DMA
        scratch_shapes=[pltpu.SemaphoreType.DMA],
        cost_estimate=pl.CostEstimate(
            flops=0,
            transcendentals=0,
            bytes_accessed=2 * nbytes,  # exact: one read + one write of the tensor
        ),
    )(x)


def identity_forward(x, *, materialize=False, min_bytes=_SMALL_TENSOR_BYTES):
    """Identity forward pass.

    materialize=False (default): return `x` unchanged — matches the PyTorch module
    semantics exactly and generates zero HBM traffic.
    materialize=True: produce a bit-exact copy.  Tensors smaller than `min_bytes`
    skip the Pallas kernel (launch overhead would dominate); larger tensors are
    copied with a single HBM->HBM DMA.
    """
    if not materialize:
        return x
    if x.ndim == 0 or x.size == 0:
        return x
    nbytes = x.size * jnp.dtype(x.dtype).itemsize
    if nbytes < min_bytes:
        # KB-scale ROI-head feature maps: identity semantics, no kernel launch.
        return x
    return _identity_copy(x)


class IdentityHead:
    """JAX mirror of the PyTorch Identity densepose head (no parameters)."""

    def __init__(self, cfg=None, input_channels=None):
        self.n_out_channels = input_channels  # same attribute as the nn.Module

    def __call__(self, x, *, materialize=False):
        return identity_forward(x, materialize=materialize)


if __name__ == "__main__":
    key = jax.random.PRNGKey(0)
    # Small NCHW input consistent with a ROI-head feature map.
    x = jax.random.normal(key, (2, 4, 16, 16), dtype=jnp.float32)

    head = IdentityHead(input_channels=4)

    # Production path: true identity, no kernel launched, no HBM traffic.
    y_fast = head(x)
    assert y_fast.shape == x.shape and y_fast.dtype == x.dtype
    assert bool(jnp.all(y_fast == x))

    # Exercise the HBM->HBM DMA copy kernel on the small input (force past the
    # size threshold so the Pallas kernel actually runs once).
    y = identity_forward(x, materialize=True, min_bytes=0)
    y = jax.block_until_ready(y)
    assert y.shape == x.shape
    assert y.dtype == x.dtype
    assert bool(jnp.all(y == x))

    # Odd-sized / narrow-dtype input: the DMA copies arbitrary shapes directly,
    # no padding or lane-dense reshaping needed.
    x_odd = jax.random.normal(jax.random.PRNGKey(1), (3, 5, 7), dtype=jnp.bfloat16)
    y_odd = jax.block_until_ready(identity_forward(x_odd, materialize=True, min_bytes=0))
    assert y_odd.shape == x_odd.shape and y_odd.dtype == x_odd.dtype
    assert bool(jnp.all(y_odd == x_odd))

    # A tensor above the default threshold takes the kernel path naturally.
    x_big = jax.random.normal(jax.random.PRNGKey(2), (1024, 1024), dtype=jnp.float32)
    y_big = jax.block_until_ready(identity_forward(x_big, materialize=True))
    assert y_big.shape == x_big.shape and y_big.dtype == x_big.dtype
    assert bool(jnp.all(y_big == x_big))

    print("KERNEL_OK")
</pallas_src>

<mosaic_0001>
module attributes {stable_mosaic.version = 11 : i64} {
  func.func @_hbm_copy_kernel(%arg0: memref<2x4x16x16xf32, #tpu.memory_space<any>>, %arg1: memref<2x4x16x16xf32, #tpu.memory_space<any>>, %arg2: memref<!tpu.dma_semaphore, #tpu.memory_space<semaphore_mem>>) attributes {dimension_semantics = [], scalar_prefetch = 0 : i64, scratch_operands = 1 : i64, tpu.core_type = #tpu.core_type<tc>} {
    tpu.enqueue_dma source(%arg0 : memref<2x4x16x16xf32, #tpu.memory_space<any>>) target(%arg1 : memref<2x4x16x16xf32, #tpu.memory_space<any>>) target_semaphore(%arg2 : memref<!tpu.dma_semaphore, #tpu.memory_space<semaphore_mem>>)
    tpu.wait_dma2 semaphore(%arg2 : memref<!tpu.dma_semaphore, #tpu.memory_space<semaphore_mem>>) src(%arg0 : memref<2x4x16x16xf32, #tpu.memory_space<any>>) dst(%arg1 : memref<2x4x16x16xf32, #tpu.memory_space<any>>)
    return
  }
}

</mosaic_0001>

<bundles_post_ra>
// kernel: tpu_custom_call.1
= control target key start
LH: loop header
LB: loop body
LE: loop exit
PB: predicated region body
PF: predicated region fallthrough
CT: control target
= control target key end

     0   :  { %s30_s6 = smov [#allocation2]   ;;  %s31_s7 = smov 131072   ;;  %s49_s0 = inlined_call_operand.hbm [shape: f32[2,4,16,16], index: 0, kind: input, shape index: {}]   ;;  %s50_s1 = inlined_call_operand.hbm [shape: f32[2,4,16,16], index: 1, kind: output, shape index: {}]  }
   0x1   :  { %s32_s8 = smov 0  }
   0x2   :  { %12 = dma.general %s49_s0, 2048, %s50_s1, %s30_s6, %s31_s7, [#allocation4], %s32_s8, 0  }
   0x3   :  { %28 = dma.done.wait [#allocation2], 2048 }
   0x4   :  { %29 = vsyncadd [#allocation2], 4294965248 }
   0x5   :  { %18 = vsyncmov [#allocation2] }
   0x8   :  { %s19_s13 = vpop.sfrf %18 }
   0x9   :  { %p24_p0 = scmp.ne.s32.totalorder %s19_s13, 0 }
   0xb   :  { %23 = shalt.err (%p24_p0)  }

</bundles_post_ra>
